<compile_context>
chip_gen: v5e
topology: v5e:2x2
jax: 0.10.0
libtpu: 0.0.40
codegen_flags: <defaults>
</compile_context>

<pallas_src>
import functools
import math

import jax
import jax.numpy as jnp
from jax.experimental import pallas as pl
from jax.experimental.pallas import tpu as pltpu

_SUBLANE_PACK = {4: 8, 2: 16, 1: 32}   # itemsize -> sublane packing


def _sum_kernel(*refs, n, weighted):
    """refs = ([w_smem,] x_0, ..., x_{n-1}, out). Blocks are (tile_r, lane_w)."""
    if weighted:
        w_ref = refs[0]
        x_refs = refs[1:1 + n]
        o_ref = refs[1 + n]
    else:
        w_ref = None
        x_refs = refs[:n]
        o_ref = refs[n]

    acc = x_refs[0][...].astype(jnp.float32)
    for i in range(1, n):
        term = x_refs[i][...].astype(jnp.float32)
        if weighted:
            term = term * w_ref[i - 1]  # scalar (SMEM) * vector (VPU)
        acc = acc + term
    o_ref[...] = acc.astype(o_ref.dtype)


def _ref_sum(xs, w=None):
    y = xs[0]
    if w is not None:
        we = jax.nn.sigmoid(w) * 2.0
        for i in range(len(xs) - 1):
            y = y + xs[i + 1] * we[i]
    else:
        for x in xs[1:]:
            y = y + x
    return y


def _tpu_info():
    """(vmem_budget_bytes, vmem_limit_bytes, tensorcores_per_chip) by generation."""
    kind = ""
    try:
        kind = jax.devices()[0].device_kind.lower()
    except Exception:
        pass
    if "v7" in kind:
        # v7x: 2 TensorCores/chip, 64 MiB physical VMEM, ~3.2 TB/s HBM ->
        # bigger per-step tiles to amortize the ~0.35us step cost.
        return 24 * 1024 * 1024, 48 * 1024 * 1024, 2
    # v5e / v6e: 1 TensorCore, 128 MiB physical VMEM.
    return 20 * 1024 * 1024, 64 * 1024 * 1024, 1


def _choose_layout(total, n, dtype, vmem_budget_bytes, num_tc):
    """Returns (lane_w, tile_r, grid) for a (r0, lane_w) slab, r0 = ceil(total/lane_w)."""
    itemsize = jnp.dtype(dtype).itemsize
    sub = _SUBLANE_PACK.get(itemsize, 8)

    # widest lane-dense last dim that divides the element count (unmasked vst/vld)
    lane_w = 128
    for cand in (1024, 512, 256, 128):
        if total % cand == 0:
            lane_w = cand
            break

    r0 = -(-total // lane_w)  # slab rows; NOT rounded up to a tile multiple
    # per-step double-buffered bytes per slab row: (n inputs + 1 output)
    per_row = 2 * (n + 1) * lane_w * itemsize
    budget_rows = max(sub, (vmem_budget_bytes // per_row) // sub * sub)

    if num_tc <= 1 and r0 <= budget_rows:
        # single-TC chip and the whole slab fits: one block, no pipeline split
        return lane_w, r0, 1

    steps = max(num_tc, -(-r0 // budget_rows))
    if num_tc > 1 and steps % num_tc:
        steps += num_tc - steps % num_tc      # even split across TensorCores
    tile_r = -(-r0 // steps)
    tile_r = max(sub, -(-tile_r // sub) * sub)  # round up to dtype sublane packing
    grid = -(-r0 // tile_r)
    if grid == 1:
        tile_r = r0  # full-array-dims block (exempt from the (sub,128) rule)
    return lane_w, tile_r, grid


def pallas_sum(xs, w=None, *, min_kernel_elems=65536,
               _vmem_budget_bytes=None, _num_tc=None):
    """xs: list of n equally-shaped arrays. w: optional raw (n-1,) parameter."""
    n = len(xs)
    assert n >= 1
    shape = xs[0].shape
    dtype = xs[0].dtype
    for x in xs:
        assert x.shape == shape and x.dtype == dtype, \
            "all summands must share shape and dtype"
    total = math.prod(shape)
    weighted = w is not None

    if n == 1:
        return xs[0]
    # tiny-input gate: pallas_call fixed cost exceeds the compute
    if total < max(min_kernel_elems, 128):
        return _ref_sum(xs, w)

    itemsize = jnp.dtype(dtype).itemsize
    vmem_budget, vmem_limit, num_tc = _tpu_info()
    if _vmem_budget_bytes is not None:
        vmem_budget = _vmem_budget_bytes
    if _num_tc is not None:
        num_tc = _num_tc

    lane_w, tile_r, grid = _choose_layout(total, n, dtype, vmem_budget, num_tc)
    r0 = -(-total // lane_w)
    slab_elems = r0 * lane_w

    def to_slab(x):
        flat = x.reshape(-1)
        if slab_elems != total:
            # rare: only the <lane_w tail of the last row (total % 128 != 0)
            flat = jnp.pad(flat, (0, slab_elems - total))
        return flat.reshape(r0, lane_w)

    args = [to_slab(x) for x in xs]
    x_spec = pl.BlockSpec((tile_r, lane_w), lambda i: (i, 0))
    in_specs = [x_spec] * n
    if weighted:
        # parameter glue: sigmoid(w) * 2 on the tiny (n-1,) vector, lives in SMEM
        w_eff = jax.nn.sigmoid(w.astype(jnp.float32)) * 2.0
        in_specs = [pl.BlockSpec(memory_space=pltpu.MemorySpace.SMEM)] + in_specs
        args = [w_eff] + args

    kernel = functools.partial(_sum_kernel, n=n, weighted=weighted)

    flops = (n - 1) * (2 if weighted else 1) * total
    bytes_accessed = (n + 1) * total * itemsize
    # TODO(synk): for very large n (>=16) consider pipeline_mode=pl.Buffered(3)
    # on the input specs when tile_r collapses; not needed for typical n.

    out = pl.pallas_call(
        kernel,
        out_shape=jax.ShapeDtypeStruct((r0, lane_w), dtype),
        grid=(grid,),
        in_specs=in_specs,
        out_specs=pl.BlockSpec((tile_r, lane_w), lambda i: (i, 0)),
        compiler_params=pltpu.CompilerParams(
            dimension_semantics=("parallel",),
            vmem_limit_bytes=vmem_limit,
        ),
        cost_estimate=pl.CostEstimate(
            flops=flops, transcendentals=0, bytes_accessed=bytes_accessed),
    )(*args)

    if slab_elems != total:
        out = out.reshape(-1)[:total]
    return out.reshape(shape)


if __name__ == "__main__":
    key = jax.random.PRNGKey(0)

    n = 3
    # small NCHW shape consistent with the module
    B, C, H, W = 2, 4, 16, 16
    keys = jax.random.split(key, 3 * n)
    xs_small = [jax.random.normal(k, (B, C, H, W), dtype=jnp.float32) for k in keys[:n]]
    # larger shape: exercises the natural tiling path (single block on 1-TC
    # chips, even 2-step grid on v7x)
    xs_big = [jax.random.normal(k, (2, 16, 64, 64), dtype=jnp.float32)
              for k in keys[n:2 * n]]
    # shape whose slab rows (150) are not a tile multiple: exercises the
    # partial-last-block path (no wrapper-side padding / slicing of full rows)
    xs_ragged = [jax.random.normal(k, (2, 4, 150, 128), dtype=jnp.float32)
                 for k in keys[2 * n:]]

    # deterministic parameter init, matching nn.Parameter(-arange(1.0, n) / 2)
    w_param = -jnp.arange(1.0, n, dtype=jnp.float32) / 2.0

    # weight=False, small shape (force kernel path past the small-input gate)
    y0 = pallas_sum(xs_small, None, min_kernel_elems=0)
    jax.block_until_ready(y0)
    ref0 = _ref_sum(xs_small, None)
    assert y0.shape == (B, C, H, W) and y0.dtype == jnp.float32
    assert jnp.allclose(y0, ref0, atol=1e-5, rtol=1e-5)

    # weight=True, small shape (force kernel path)
    y1 = pallas_sum(xs_small, w_param, min_kernel_elems=0)
    jax.block_until_ready(y1)
    ref1 = _ref_sum(xs_small, w_param)
    assert y1.shape == (B, C, H, W) and y1.dtype == jnp.float32
    assert jnp.allclose(y1, ref1, atol=1e-5, rtol=1e-5)

    # weight=True, larger shape: natural generation-aware layout
    y2 = pallas_sum(xs_big, w_param)
    jax.block_until_ready(y2)
    ref2 = _ref_sum(xs_big, w_param)
    assert jnp.allclose(y2, ref2, atol=1e-5, rtol=1e-5)

    # weight=True, ragged rows with a forced small budget + 2-TC split:
    # multi-step grid with a partial (masked) last block, no row padding.
    y3 = pallas_sum(xs_ragged, w_param, min_kernel_elems=0,
                    _vmem_budget_bytes=2 * 1024 * 1024, _num_tc=2)
    jax.block_until_ready(y3)
    ref3 = _ref_sum(xs_ragged, w_param)
    assert y3.shape == xs_ragged[0].shape
    assert jnp.allclose(y3, ref3, atol=1e-5, rtol=1e-5)

    # weight=False, big shape
    y4 = pallas_sum(xs_big, None)
    jax.block_until_ready(y4)
    ref4 = _ref_sum(xs_big, None)
    assert jnp.allclose(y4, ref4, atol=1e-5, rtol=1e-5)

    print("KERNEL_OK")
</pallas_src>

<mosaic_0001>
module attributes {stable_mosaic.version = 11 : i64} {
  func.func @_sum_kernel(%arg0: i32, %arg1: memref<2x1024xf32, #tpu.memory_space<vmem>>, %arg2: memref<2x1024xf32, #tpu.memory_space<vmem>>, %arg3: memref<2x1024xf32, #tpu.memory_space<vmem>>, %arg4: memref<2x1024xf32, #tpu.memory_space<vmem>>) attributes {dimension_semantics = [#tpu.dimension_semantics<parallel>], iteration_bounds = array<i64: 1>, scalar_prefetch = 0 : i64, scratch_operands = 0 : i64, tpu.core_type = #tpu.core_type<tc>, window_params = [{transform_indices = @transform_0, window_bounds = array<i64: 2, 1024>}, {transform_indices = @transform_1, window_bounds = array<i64: 2, 1024>}, {transform_indices = @transform_2, window_bounds = array<i64: 2, 1024>}, {transform_indices = @transform_3, window_bounds = array<i64: 2, 1024>}]} {
    %c0 = arith.constant 0 : index
    %c0_0 = arith.constant 0 : index
    %0 = vector.load %arg1[%c0, %c0_0] : memref<2x1024xf32, #tpu.memory_space<vmem>>, vector<2x1024xf32>
    %c0_1 = arith.constant 0 : index
    %c0_2 = arith.constant 0 : index
    %1 = vector.load %arg2[%c0_1, %c0_2] : memref<2x1024xf32, #tpu.memory_space<vmem>>, vector<2x1024xf32>
    %2 = arith.addf %0, %1 : vector<2x1024xf32>
    %c0_3 = arith.constant 0 : index
    %c0_4 = arith.constant 0 : index
    %3 = vector.load %arg3[%c0_3, %c0_4] : memref<2x1024xf32, #tpu.memory_space<vmem>>, vector<2x1024xf32>
    %4 = arith.addf %2, %3 : vector<2x1024xf32>
    %c0_5 = arith.constant 0 : index
    %c0_6 = arith.constant 0 : index
    %5 = vector.load %arg4[%c0_5, %c0_6] : memref<2x1024xf32, #tpu.memory_space<vmem>>, vector<2x1024xf32>
    tpu.vector_store %arg4[%c0_5, %c0_6], %4 {strides = array<i32>} : memref<2x1024xf32, #tpu.memory_space<vmem>>, vector<2x1024xf32>,
    return
  }
  func.func @transform_0(%arg0: i32) -> (i32, i32) {
    %c0_i32 = arith.constant 0 : i32
    %c0_i32_0 = arith.constant 0 : i32
    return %arg0, %c0_i32 : i32, i32
  }
  func.func @transform_1(%arg0: i32) -> (i32, i32) {
    %c0_i32 = arith.constant 0 : i32
    %c0_i32_0 = arith.constant 0 : i32
    return %arg0, %c0_i32 : i32, i32
  }
  func.func @transform_2(%arg0: i32) -> (i32, i32) {
    %c0_i32 = arith.constant 0 : i32
    %c0_i32_0 = arith.constant 0 : i32
    return %arg0, %c0_i32 : i32, i32
  }
  func.func @transform_3(%arg0: i32) -> (i32, i32) {
    %c0_i32 = arith.constant 0 : i32
    %c0_i32_0 = arith.constant 0 : i32
    return %arg0, %c0_i32 : i32, i32
  }
}

</mosaic_0001>

<bundles_post_ra>
// kernel: tpu_custom_call.1
= control target key start
LH: loop header
LB: loop body
LE: loop exit
PB: predicated region body
PF: predicated region fallthrough
CT: control target
= control target key end

     0   :  { %8 = vsyncpa [#allocation3], 0  ;;  %s228_s0 = inlined_call_operand.hbm [shape: f32[2,1024], index: 0, kind: input, shape index: {}]   ;;  %s229_s1 = inlined_call_operand.hbm [shape: f32[2,1024], index: 1, kind: input, shape index: {}]   ;;  %s230_s2 = inlined_call_operand.hbm [shape: f32[2,1024], index: 2, kind: input, shape index: {}]   ;;  %s231_s3 = inlined_call_operand.hbm [shape: f32[2,1024], index: 3, kind: output, shape index: {}]  }
   0x1   :  { %9 = vsyncpa [#allocation6], 0  ;;  %s27_s14 = sshll.u32 %s229_s1, 4  ;;  %s28_s14 = int_to_ptr.hbm [resolvable:$true] %s27_s14 }
   0x2   :  { %10 = vsyncpa [#allocation4], 0  ;;  %s192_s15 = smov [#allocation5]   ;;  %s16_s19 = sshll.u32 %s228_s0, 4  ;;  %s17_s19 = int_to_ptr.hbm [resolvable:$true] %s16_s19 }
   0x3   :  { %s29_s16 = sshll.u32 %s192_s15, 4  ;;  %s193_s20 = smov [#allocation2]   ;;  %s30_s16 = int_to_ptr.vmem [resolvable:$true] %s29_s16 }
   0x4   :  { %32 = dma.hbm_to_vmem [thread:$0]  %s28_s14, 256, %s30_s16, [#allocation6]  }
   0x5   :  { %s18_s21 = sshll.u32 %s193_s20, 4  ;;  %s38_s24 = sshll.u32 %s230_s2, 4  ;;  %s19_s21 = int_to_ptr.vmem [resolvable:$true] %s18_s21  ;;  %s39_s24 = int_to_ptr.hbm [resolvable:$true] %s38_s24 }
   0x6   :  { %21 = dma.hbm_to_vmem [thread:$0]  %s17_s19, 256, %s19_s21, [#allocation3]  }
   0x7   :  { %s194_s1 = smov [#allocation7]  }
   0x8   :  { %s40_s25 = sshll.u32 %s194_s1, 4  ;;  %s41_s25 = int_to_ptr.vmem [resolvable:$true] %s40_s25 }
   0x9   :  { %43 = dma.hbm_to_vmem [thread:$0]  %s39_s24, 256, %s41_s25, [#allocation6]  }
   0xa   :  { %186 = dma.done.wait [#allocation3], 256  }
   0xb   :  { %187 = vsyncadd [#allocation3], 4294967040 }
   0xc   :  { %188 = dma.done.wait [#allocation6], 512  }
   0xd   :  { %189 = vsyncadd [#allocation6], 4294966784  ;;  %v56_v0 = vld [vmem:[#allocation2] sm:$0xff]  ;;  %v58_v1 = vld [vmem:[#allocation5] sm:$0xff]  ;;  %s195_s0 = smov [#allocation8]   ;;  %s75_s28 = sshll.u32 %s231_s3, 4  ;;  %s76_s28 = int_to_ptr.hbm [resolvable:$true] %s75_s28 }
   0xe   :  { %v62_v2 = vld [vmem:[#allocation7] sm:$0xff]  ;;  %v60_v3 = vadd.f32 %v58_v1, %v56_v0  ;;  %v57_v4 = vld [vmem:[#allocation2 + $0x8] sm:$0xff]  ;;  %v59_v5 = vld [vmem:[#allocation5 + $0x8] sm:$0xff]  ;;  %s73_s2 = sshll.u32 %s195_s0, 4  ;;  %s74_s2 = int_to_ptr.vmem [resolvable:$true] %s73_s2 }
   0xf   :  { %v63_v6 = vld [vmem:[#allocation7 + $0x8] sm:$0xff]  ;;  %v61_v7 = vadd.f32 %v59_v5, %v57_v4 }
  0x10   :  { %v64_v8 = vadd.f32 %v62_v2, %v60_v3 }
  0x11   :  { %v65_v9 = vadd.f32 %v63_v6, %v61_v7 }
  0x12   :  { %66 = vst [vmem:[#allocation8] sm:$0xff] %v64_v8 }
  0x13   :  { %67 = vst [vmem:[#allocation8 + $0x8] sm:$0xff] %v65_v9 }
  0x14   :  { %78 = dma.vmem_to_hbm [thread:$0]  %s74_s2, 256, %s76_s28, [#allocation4]  }
  0x15   :  { %190 = dma.done.wait [#allocation4], 256  }
  0x16   :  { %191 = vsyncadd [#allocation4], 4294967040 }
  0x17   :  { %83 = vsyncpa [#allocation3], 1 }
  0x18   :  { %84 = vsyncpa [#allocation6], 1 }
  0x19   :  { %85 = vsyncpa [#allocation4], 1 }

</bundles_post_ra>
